<compile_context>
chip_gen: v5e
topology: v5e:2x2
jax: 0.10.0
libtpu: 0.0.40
codegen_flags: <defaults>
</compile_context>

<pallas_src>
import functools

import numpy as np

import jax
import jax.numpy as jnp
from jax import lax
from jax.experimental import pallas as pl
from jax.experimental.pallas import tpu as pltpu


def _shift_with_zero_fill(v, delta):
    """out[:, p] = v[:, p + delta] when 0 <= p + delta < L, else 0 (static delta)."""
    if delta == 0:
        return v
    L = v.shape[-1]
    if delta >= L or delta <= -L:
        return jnp.zeros_like(v)
    fill = jnp.zeros((v.shape[0], abs(delta)), v.dtype)
    if delta > 0:
        return jnp.concatenate([v[:, delta:], fill], axis=1)
    return jnp.concatenate([fill, v[:, :L + delta]], axis=1)


def _sepconv_kernel(x_ref, wdw_ref, wpw_ref, cm_ref, o_ref, acc_ref, *,
                    H, W, Wo, tH, nHT, d, pad, col_needed, gaps, ragged,
                    chunk=2048):
    # x_ref  : (1, Nb*Cin, H*W)   un-padded input, spatial flattened on lanes,
    #                             resident across the row-tile grid axis.
    # wdw_ref: (Nb*Cin, 9)        depthwise taps, k = kh*3 + kw
    # wpw_ref: (Nb*Cout, Nb*Cin)  block-diagonal pointwise weights
    # cm_ref : (3, Lw)            per-kw column validity mask (in-kernel padding)
    # o_ref  : (1, Nb*Cout, tH*Wo) lane-dense output row tile
    # acc_ref: (Nb*Cin, Lw)       f32 depthwise accumulator scratch
    HW = H * W
    Lw = (tH - 1) * W + Wo
    Kg = x_ref.shape[1]

    def tap_weight(k):
        return wdw_ref[:, k:k + 1].astype(jnp.float32)          # (Kg, 1)

    def col_mask(kw, c0, cl):
        if not col_needed[kw]:
            return None
        return cm_ref[kw:kw + 1, c0:c0 + cl]                     # (1, cl) 0/1 f32

    def accumulate_static(r0):
        # r0 is a Python int: clamping / realignment are resolved at trace time.
        # Streams through the VMEM accumulator so vreg pressure stays bounded.
        acc_ref[...] = jnp.zeros_like(acc_ref)
        for kh in range(3):
            for kw in range(3):
                k = kh * 3 + kw
                start = (r0 + kh * d - pad) * W + (kw * d - pad)
                start_c = min(max(start, 0), HW - Lw)
                patch = x_ref[0, :, pl.ds(start_c, Lw)].astype(jnp.float32)
                patch = _shift_with_zero_fill(patch, start - start_c)
                m = col_mask(kw, 0, Lw)
                if m is not None:
                    patch = patch * m
                acc_ref[...] += patch * tap_weight(k)

    def accumulate_interior(r0):
        # r0 is traced; the wrapper guarantees every tap window is in bounds.
        # Chunk the lane axis so the per-chunk accumulator stays in registers.
        for c0 in range(0, Lw, chunk):
            cl = min(chunk, Lw - c0)
            acc = jnp.zeros((Kg, cl), jnp.float32)
            for kh in range(3):
                for kw in range(3):
                    k = kh * 3 + kw
                    off = (kh * d - pad) * W + (kw * d - pad) + c0
                    patch = x_ref[0, :, pl.ds(r0 * W + off, cl)]
                    patch = patch.astype(jnp.float32)
                    m = col_mask(kw, c0, cl)
                    if m is not None:
                        patch = patch * m
                    acc = acc + patch * tap_weight(k)
            acc_ref[:, c0:c0 + cl] = acc

    if nHT == 1:
        accumulate_static(0)
    else:
        t = pl.program_id(1)
        static_tiles = {0, nHT - 1}
        if ragged:
            static_tiles.add(nHT - 2)     # keep the dynamic path clamp-free
        for ts in sorted(static_tiles):
            pl.when(t == ts)(functools.partial(accumulate_static, ts * tH))
        lo = 1
        hi = nHT - 3 if ragged else nHT - 2
        if hi >= lo:
            @pl.when(jnp.logical_and(t >= lo, t <= hi))
            def _interior():
                accumulate_interior(t * tH)

    # Pointwise 1x1: compact the inter-row gap columns (if any) on the Cin side,
    # one small MXU matmul, then a single lane-dense unmasked store.
    acc = acc_ref[...]
    if gaps:
        acc = jnp.concatenate([acc[:, r * W:r * W + Wo] for r in range(tH)],
                              axis=1)
    z = jnp.dot(wpw_ref[...].astype(jnp.float32), acc,
                preferred_element_type=jnp.float32)
    o_ref[0, :, :] = z.astype(o_ref.dtype)


def _plan_row_tiles(Ho, Wo, pad, gaps, n_batch_steps, *, cap, row_tile):
    """Pick output rows per grid step.

    Prefers the largest tile that (a) keeps the output block under `cap`
    elements, (b) keeps the output block's last dim 128-lane aligned (or covers
    the whole image), (c) leaves >= 2 grid steps when the batch axis has only
    one step (keeps both v7x TensorCores busy), and (d) keeps the unrolled gap
    compaction bounded when padding < dilation."""
    max_rows_gap = 64

    def n_tiles(tH):
        return -(-Ho // tH)

    def ok(tH, need_multi):
        if tH < 1 or tH > Ho:
            return False
        if tH * Wo > cap:
            return False
        if gaps and tH > max_rows_gap:
            return False
        n = n_tiles(tH)
        if n > 1:
            if tH < pad + 1:
                return False
            if (tH * Wo) % 128 != 0:
                return False
        if need_multi and n < 2:
            return False
        return True

    if row_tile is not None:
        tH = max(1, min(int(row_tile), Ho))
        if not ok(tH, False):
            tH = Ho
    else:
        need_multi = (n_batch_steps == 1 and Ho > 1)
        divisors = [v for v in range(Ho, 0, -1) if Ho % v == 0]
        tH = next((v for v in divisors if ok(v, need_multi)), None)
        if tH is None:  # no exact divisor works: allow a ragged last tile
            hi = min(Ho, max(cap // max(Wo, 1), 1))
            tH = next((v for v in range(hi, 0, -1) if ok(v, need_multi)), None)
        if tH is None:  # give up on the >=2-steps preference
            tH = next((v for v in divisors if ok(v, False)), None)
        if tH is None:  # always-correct last resort: one whole-image tile
            tH = Ho
    return tH, n_tiles(tH), (Ho % tH) != 0


def separable_conv2d(x, w_dw, w_pw, *, padding, dilation=1, groups=None,
                     row_tile=None, tile_cap=16384):
    """Forward pass of SeparableConv2d.

    x: (N, Cin, H, W); w_dw: (Cin, 1, 3, 3); w_pw: (Cout, Cin, 1, 1)."""
    N, Cin, H, W = x.shape
    Cout = w_pw.shape[0]
    if groups is None:
        groups = Cin
    # TODO(synk): only depthwise grouping (groups == kernels_in) is implemented.
    assert groups == Cin, "kernel implements the depthwise case (groups == kernels_in)"
    assert w_dw.shape == (Cin, 1, 3, 3) and w_pw.shape[:2] == (Cout, Cin)
    d = int(dilation)
    pad = int(padding)
    assert d >= 1 and pad >= 0

    # padding <= dilation is handled fully in-kernel; for the rare
    # padding > dilation case pre-pad only the excess so the effective
    # in-kernel padding is exactly `dilation` (keeps the tap windows dense).
    if pad > d:
        e = pad - d
        x = jnp.pad(x, ((0, 0), (0, 0), (e, e), (e, e)))
        H, W = H + 2 * e, W + 2 * e
        pad = d

    Ho = H + 2 * pad - 2 * d
    Wo = W + 2 * pad - 2 * d
    assert Ho > 0 and Wo > 0, "output spatial dims must be positive"
    HW = H * W
    gaps = Wo < W      # padding < dilation leaves 2*(d-pad) dead columns per row

    # Sublane packing: put Nb batch images on the 8-sublane axis when Cin < 8.
    nb_cands = [nb for nb in range(1, N + 1)
                if N % nb == 0 and nb * Cin <= 8
                and nb * Cin * HW * x.dtype.itemsize <= 8 * 2 ** 20]
    Nb = max(nb_cands) if nb_cands else 1
    NB = N // Nb
    Kg, Mg = Nb * Cin, Nb * Cout

    tH, nHT, ragged = _plan_row_tiles(Ho, Wo, pad, gaps, NB,
                                      cap=tile_cap, row_tile=row_tile)

    # The dynamic ("interior") row tiles must never need boundary clamping;
    # verify numerically and fall back to one whole-image tile if violated
    # (never expected for the tile sizes the planner produces).
    lo_t = 1
    hi_t = nHT - 3 if ragged else nHT - 2
    if nHT > 1 and hi_t >= lo_t:
        Lw_chk = (tH - 1) * W + Wo
        s_min = (lo_t * tH + 0 * d - pad) * W + (0 * d - pad)
        e_max = (hi_t * tH + 2 * d - pad) * W + (2 * d - pad) + Lw_chk
        if s_min < 0 or e_max > HW:
            tH, nHT, ragged = Ho, 1, False

    Lw = (tH - 1) * W + Wo
    tile = tH * Wo

    # Host-side constants: per-kw column validity masks (in-kernel horizontal
    # zero padding; no jnp.pad pass over the activations).
    cc = np.arange(Lw) % W
    cm_np = np.zeros((3, Lw), np.float32)
    col_needed = []
    for kw in range(3):
        wi = cc + (kw * d - pad)
        m = (wi >= 0) & (wi < W)
        cm_np[kw] = m.astype(np.float32)
        col_needed.append(not bool(m.all()))
    colmask = jnp.asarray(cm_np)

    xg = x.reshape(NB, Kg, HW)                                  # free reshape, NCHW native
    wdw = jnp.tile(w_dw.reshape(Cin, 9), (Nb, 1))               # (Kg, 9)
    wpw = jnp.kron(jnp.eye(Nb, dtype=w_pw.dtype),
                   w_pw.reshape(Cout, Cin))                     # (Mg, Kg) block-diag

    # Explicit VMEM budget (v7x: 64 MiB physical / 32 MiB default scoped).
    isz = x.dtype.itemsize
    vmem_est = (2 * Kg * HW * isz          # resident input (double-buffered)
                + 2 * Mg * tile * isz      # output blocks
                + Kg * Lw * 4              # accumulator scratch
                + 3 * Lw * 4 + Kg * 9 * 4 + Mg * Kg * 4)
    vmem_limit = int(max(32 * 2 ** 20, min(96 * 2 ** 20, 1.5 * vmem_est)))

    kernel = functools.partial(
        _sepconv_kernel, H=H, W=W, Wo=Wo, tH=tH, nHT=nHT, d=d, pad=pad,
        col_needed=tuple(col_needed), gaps=gaps, ragged=ragged)

    out_flat = pl.pallas_call(
        kernel,
        out_shape=jax.ShapeDtypeStruct((NB, Mg, Ho * Wo), x.dtype),
        grid=(NB, nHT),
        in_specs=[
            # whole image per batch group, resident across the row-tile axis
            pl.BlockSpec((1, Kg, HW), lambda b, t: (b, 0, 0)),
            pl.BlockSpec((Kg, 9), lambda b, t: (0, 0)),
            pl.BlockSpec((Mg, Kg), lambda b, t: (0, 0)),
            pl.BlockSpec((3, Lw), lambda b, t: (0, 0)),
        ],
        out_specs=pl.BlockSpec((1, Mg, tile), lambda b, t: (b, 0, t)),
        scratch_shapes=[pltpu.VMEM((Kg, Lw), jnp.float32)],
        compiler_params=pltpu.CompilerParams(
            dimension_semantics=("parallel", "parallel"),
            vmem_limit_bytes=vmem_limit),
    )(xg, wdw, wpw, colmask)

    return out_flat.reshape(N, Cout, Ho, Wo)      # free reshape back to NCHW


def _reference(x, w_dw, w_pw, *, padding, dilation, groups):
    y = lax.conv_general_dilated(
        x, w_dw, window_strides=(1, 1),
        padding=((padding, padding), (padding, padding)),
        rhs_dilation=(dilation, dilation),
        feature_group_count=groups,
        dimension_numbers=("NCHW", "OIHW", "NCHW"))
    y = lax.conv_general_dilated(
        y, w_pw, window_strides=(1, 1), padding="VALID",
        dimension_numbers=("NCHW", "OIHW", "NCHW"))
    return y


if __name__ == "__main__":
    root = jax.random.PRNGKey(0)

    def run_case(idx, *, N, Cin, Cout, H, W, padding, dilation, row_tile=None):
        kx, k1, k2 = jax.random.split(jax.random.fold_in(root, idx), 3)
        x = jax.random.normal(kx, (N, Cin, H, W), dtype=jnp.float32)
        w_dw = 0.1 * jax.random.normal(k1, (Cin, 1, 3, 3), dtype=jnp.float32)
        w_pw = 0.1 * jax.random.normal(k2, (Cout, Cin, 1, 1), dtype=jnp.float32)
        out = separable_conv2d(x, w_dw, w_pw, padding=padding,
                               dilation=dilation, groups=Cin, row_tile=row_tile)
        out = jax.block_until_ready(out)
        ref = _reference(x, w_dw, w_pw, padding=padding, dilation=dilation,
                         groups=Cin)
        assert out.shape == ref.shape, (idx, out.shape, ref.shape)
        err = float(jnp.max(jnp.abs(out - ref)))
        assert jnp.allclose(out, ref, atol=1e-5, rtol=1e-5), (idx, err)

    # Main module-consistent case: kernels_in=4, kernels_out=8, padding=1,
    # dilation=1, depthwise groups.  Exercises batch packing onto sublanes and
    # the two statically-clamped boundary row tiles.
    run_case(0, N=2, Cin=4, Cout=8, H=16, W=16, padding=1, dilation=1)
    # Dilated, spatial-preserving case; row_tile forces 4 tiles so the dynamic
    # interior (chunked) path is exercised as well.
    run_case(1, N=1, Cin=4, Cout=8, H=32, W=32, padding=2, dilation=2,
             row_tile=8)
    # padding < dilation: output rows are narrower than input rows, exercising
    # the pre-matmul gap compaction and odd channel counts.
    run_case(2, N=2, Cin=3, Cout=5, H=16, W=16, padding=1, dilation=2)

    print("KERNEL_OK")
</pallas_src>

<mosaic_0001>
module attributes {stable_mosaic.version = 11 : i64} {
  func.func @_sepconv_kernel(%arg0: i32, %arg1: i32, %arg2: memref<1x8x256xf32, #tpu.memory_space<vmem>>, %arg3: memref<8x9xf32, #tpu.memory_space<vmem>>, %arg4: memref<16x8xf32, #tpu.memory_space<vmem>>, %arg5: memref<3x128xf32, #tpu.memory_space<vmem>>, %arg6: memref<1x16x128xf32, #tpu.memory_space<vmem>>, %arg7: memref<8x128xf32, #tpu.memory_space<vmem>>) attributes {dimension_semantics = [#tpu.dimension_semantics<parallel>, #tpu.dimension_semantics<parallel>], iteration_bounds = array<i64: 1, 2>, scalar_prefetch = 0 : i64, scratch_operands = 1 : i64, tpu.core_type = #tpu.core_type<tc>, window_params = [{transform_indices = @transform_0, window_bounds = array<i64: 1, 8, 256>}, {pipeline_mode = #tpu.pipeline_mode<synchronous>, transform_indices = @transform_1, window_bounds = array<i64: 8, 9>}, {pipeline_mode = #tpu.pipeline_mode<synchronous>, transform_indices = @transform_2, window_bounds = array<i64: 16, 8>}, {pipeline_mode = #tpu.pipeline_mode<synchronous>, transform_indices = @transform_3, window_bounds = array<i64: 3, 128>}, {transform_indices = @transform_4, window_bounds = array<i64: 1, 16, 128>}]} {
    %c0_i32 = arith.constant 0 : i32
    %0 = arith.cmpi eq, %arg1, %c0_i32 : i32
    %1 = arith.extui %0 : i1 to i32
    %c0_i32_0 = arith.constant 0 : i32
    %2 = arith.cmpi ne, %1, %c0_i32_0 : i32
    scf.if %2 {
      %cst_8 = arith.constant 0.000000e+00 : f32
      %12 = vector.broadcast %cst_8 : f32 to vector<8x128xf32>
      %c0_9 = arith.constant 0 : index
      %c0_10 = arith.constant 0 : index
      %13 = vector.load %arg7[%c0_9, %c0_10] : memref<8x128xf32, #tpu.memory_space<vmem>>, vector<8x128xf32>
      tpu.vector_store %arg7[%c0_9, %c0_10], %12 {strides = array<i32>} : memref<8x128xf32, #tpu.memory_space<vmem>>, vector<8x128xf32>,
      %c0_11 = arith.constant 0 : index
      %c0_12 = arith.constant 0 : index
      %c0_13 = arith.constant 0 : index
      %14 = vector.load %arg2[%c0_11, %c0_12, %c0_13] : memref<1x8x256xf32, #tpu.memory_space<vmem>>, vector<1x8x128xf32>
      %15 = vector.shape_cast %14 : vector<1x8x128xf32> to vector<8x128xf32>
      %cst_14 = arith.constant 0.000000e+00 : f32
      %16 = vector.broadcast %cst_14 : f32 to vector<8x17xf32>
      %17 = vector.extract_strided_slice %15 {offsets = [0, 0], sizes = [8, 111], strides = [1, 1]} : vector<8x128xf32> to vector<8x111xf32>
      %18 = tpu.concatenate %16, %17 in 1 : vector<8x17xf32>, vector<8x111xf32> -> vector<8x128xf32>
      %c0_15 = arith.constant 0 : index
      %c0_16 = arith.constant 0 : index
      %19 = vector.load %arg5[%c0_15, %c0_16] : memref<3x128xf32, #tpu.memory_space<vmem>>, vector<1x128xf32>
      %20 = vector.broadcast %19 : vector<1x128xf32> to vector<8x128xf32>
      %21 = arith.mulf %18, %20 : vector<8x128xf32>
      %c0_17 = arith.constant 0 : index
      %c0_18 = arith.constant 0 : index
      %22 = vector.load %arg7[%c0_17, %c0_18] : memref<8x128xf32, #tpu.memory_space<vmem>>, vector<8x128xf32>
      %c0_19 = arith.constant 0 : index
      %c0_20 = arith.constant 0 : index
      %23 = vector.load %arg3[%c0_19, %c0_20] : memref<8x9xf32, #tpu.memory_space<vmem>>, vector<8x1xf32>
      %24 = vector.broadcast %23 : vector<8x1xf32> to vector<8x128xf32>
      %25 = arith.mulf %21, %24 : vector<8x128xf32>
      %26 = arith.addf %22, %25 : vector<8x128xf32>
      %c0_21 = arith.constant 0 : index
      %c0_22 = arith.constant 0 : index
      %27 = vector.load %arg7[%c0_21, %c0_22] : memref<8x128xf32, #tpu.memory_space<vmem>>, vector<8x128xf32>
      tpu.vector_store %arg7[%c0_21, %c0_22], %26 {strides = array<i32>} : memref<8x128xf32, #tpu.memory_space<vmem>>, vector<8x128xf32>,
      %c0_23 = arith.constant 0 : index
      %c0_24 = arith.constant 0 : index
      %c0_25 = arith.constant 0 : index
      %28 = vector.load %arg2[%c0_23, %c0_24, %c0_25] : memref<1x8x256xf32, #tpu.memory_space<vmem>>, vector<1x8x128xf32>
      %29 = vector.shape_cast %28 : vector<1x8x128xf32> to vector<8x128xf32>
      %cst_26 = arith.constant 0.000000e+00 : f32
      %30 = vector.broadcast %cst_26 : f32 to vector<8x16xf32>
      %31 = vector.extract_strided_slice %29 {offsets = [0, 0], sizes = [8, 112], strides = [1, 1]} : vector<8x128xf32> to vector<8x112xf32>
      %32 = tpu.concatenate %30, %31 in 1 : vector<8x16xf32>, vector<8x112xf32> -> vector<8x128xf32>
      %c0_27 = arith.constant 0 : index
      %c0_28 = arith.constant 0 : index
      %33 = vector.load %arg7[%c0_27, %c0_28] : memref<8x128xf32, #tpu.memory_space<vmem>>, vector<8x128xf32>
      %c0_29 = arith.constant 0 : index
      %c1 = arith.constant 1 : index
      %34 = vector.load %arg3[%c0_29, %c1] : memref<8x9xf32, #tpu.memory_space<vmem>>, vector<8x1xf32>
      %35 = vector.broadcast %34 : vector<8x1xf32> to vector<8x128xf32>
      %36 = arith.mulf %32, %35 : vector<8x128xf32>
      %37 = arith.addf %33, %36 : vector<8x128xf32>
      %c0_30 = arith.constant 0 : index
      %c0_31 = arith.constant 0 : index
      %38 = vector.load %arg7[%c0_30, %c0_31] : memref<8x128xf32, #tpu.memory_space<vmem>>, vector<8x128xf32>
      tpu.vector_store %arg7[%c0_30, %c0_31], %37 {strides = array<i32>} : memref<8x128xf32, #tpu.memory_space<vmem>>, vector<8x128xf32>,
      %c0_32 = arith.constant 0 : index
      %c0_33 = arith.constant 0 : index
      %c0_34 = arith.constant 0 : index
      %39 = vector.load %arg2[%c0_32, %c0_33, %c0_34] : memref<1x8x256xf32, #tpu.memory_space<vmem>>, vector<1x8x128xf32>
      %40 = vector.shape_cast %39 : vector<1x8x128xf32> to vector<8x128xf32>
      %cst_35 = arith.constant 0.000000e+00 : f32
      %41 = vector.broadcast %cst_35 : f32 to vector<8x15xf32>
      %42 = vector.extract_strided_slice %40 {offsets = [0, 0], sizes = [8, 113], strides = [1, 1]} : vector<8x128xf32> to vector<8x113xf32>
      %43 = tpu.concatenate %41, %42 in 1 : vector<8x15xf32>, vector<8x113xf32> -> vector<8x128xf32>
      %c2 = arith.constant 2 : index
      %c0_36 = arith.constant 0 : index
      %44 = vector.load %arg5[%c2, %c0_36] : memref<3x128xf32, #tpu.memory_space<vmem>>, vector<1x128xf32>
      %45 = vector.broadcast %44 : vector<1x128xf32> to vector<8x128xf32>
      %46 = arith.mulf %43, %45 : vector<8x128xf32>
      %c0_37 = arith.constant 0 : index
      %c0_38 = arith.constant 0 : index
      %47 = vector.load %arg7[%c0_37, %c0_38] : memref<8x128xf32, #tpu.memory_space<vmem>>, vector<8x128xf32>
      %c0_39 = arith.constant 0 : index
      %c2_40 = arith.constant 2 : index
      %48 = vector.load %arg3[%c0_39, %c2_40] : memref<8x9xf32, #tpu.memory_space<vmem>>, vector<8x1xf32>
      %49 = vector.broadcast %48 : vector<8x1xf32> to vector<8x128xf32>
      %50 = arith.mulf %46, %49 : vector<8x128xf32>
      %51 = arith.addf %47, %50 : vector<8x128xf32>
      %c0_41 = arith.constant 0 : index
      %c0_42 = arith.constant 0 : index
      %52 = vector.load %arg7[%c0_41, %c0_42] : memref<8x128xf32, #tpu.memory_space<vmem>>, vector<8x128xf32>
      tpu.vector_store %arg7[%c0_41, %c0_42], %51 {strides = array<i32>} : memref<8x128xf32, #tpu.memory_space<vmem>>, vector<8x128xf32>,
      %c0_43 = arith.constant 0 : index
      %c0_44 = arith.constant 0 : index
      %c0_45 = arith.constant 0 : index
      %53 = vector.load %arg2[%c0_43, %c0_44, %c0_45] : memref<1x8x256xf32, #tpu.memory_space<vmem>>, vector<1x8x128xf32>
      %54 = vector.shape_cast %53 : vector<1x8x128xf32> to vector<8x128xf32>
      %cst_46 = arith.constant 0.000000e+00 : f32
      %55 = vector.broadcast %cst_46 : f32 to vector<8x1xf32>
      %56 = vector.extract_strided_slice %54 {offsets = [0, 0], sizes = [8, 127], strides = [1, 1]} : vector<8x128xf32> to vector<8x127xf32>
      %57 = tpu.concatenate %55, %56 in 1 : vector<8x1xf32>, vector<8x127xf32> -> vector<8x128xf32>
      %c0_47 = arith.constant 0 : index
      %c0_48 = arith.constant 0 : index
      %58 = vector.load %arg5[%c0_47, %c0_48] : memref<3x128xf32, #tpu.memory_space<vmem>>, vector<1x128xf32>
      %59 = vector.broadcast %58 : vector<1x128xf32> to vector<8x128xf32>
      %60 = arith.mulf %57, %59 : vector<8x128xf32>
      %c0_49 = arith.constant 0 : index
      %c0_50 = arith.constant 0 : index
      %61 = vector.load %arg7[%c0_49, %c0_50] : memref<8x128xf32, #tpu.memory_space<vmem>>, vector<8x128xf32>
      %c0_51 = arith.constant 0 : index
      %c3 = arith.constant 3 : index
      %62 = vector.load %arg3[%c0_51, %c3] : memref<8x9xf32, #tpu.memory_space<vmem>>, vector<8x1xf32>
      %63 = vector.broadcast %62 : vector<8x1xf32> to vector<8x128xf32>
      %64 = arith.mulf %60, %63 : vector<8x128xf32>
      %65 = arith.addf %61, %64 : vector<8x128xf32>
      %c0_52 = arith.constant 0 : index
      %c0_53 = arith.constant 0 : index
      %66 = vector.load %arg7[%c0_52, %c0_53] : memref<8x128xf32, #tpu.memory_space<vmem>>, vector<8x128xf32>
      tpu.vector_store %arg7[%c0_52, %c0_53], %65 {strides = array<i32>} : memref<8x128xf32, #tpu.memory_space<vmem>>, vector<8x128xf32>,
      %c0_54 = arith.constant 0 : index
      %c0_55 = arith.constant 0 : index
      %c0_56 = arith.constant 0 : index
      %67 = vector.load %arg2[%c0_54, %c0_55, %c0_56] : memref<1x8x256xf32, #tpu.memory_space<vmem>>, vector<1x8x128xf32>
      %68 = vector.shape_cast %67 : vector<1x8x128xf32> to vector<8x128xf32>
      %c0_57 = arith.constant 0 : index
      %c0_58 = arith.constant 0 : index
      %69 = vector.load %arg7[%c0_57, %c0_58] : memref<8x128xf32, #tpu.memory_space<vmem>>, vector<8x128xf32>
      %c0_59 = arith.constant 0 : index
      %c4 = arith.constant 4 : index
      %70 = vector.load %arg3[%c0_59, %c4] : memref<8x9xf32, #tpu.memory_space<vmem>>, vector<8x1xf32>
      %71 = vector.broadcast %70 : vector<8x1xf32> to vector<8x128xf32>
      %72 = arith.mulf %68, %71 : vector<8x128xf32>
      %73 = arith.addf %69, %72 : vector<8x128xf32>
      %c0_60 = arith.constant 0 : index
      %c0_61 = arith.constant 0 : index
      %74 = vector.load %arg7[%c0_60, %c0_61] : memref<8x128xf32, #tpu.memory_space<vmem>>, vector<8x128xf32>
      tpu.vector_store %arg7[%c0_60, %c0_61], %73 {strides = array<i32>} : memref<8x128xf32, #tpu.memory_space<vmem>>, vector<8x128xf32>,
      %c0_62 = arith.constant 0 : index
      %c0_63 = arith.constant 0 : index
      %c1_64 = arith.constant 1 : index
      %75 = vector.load %arg2[%c0_62, %c0_63, %c1_64] : memref<1x8x256xf32, #tpu.memory_space<vmem>>, vector<1x8x128xf32>
      %76 = vector.shape_cast %75 : vector<1x8x128xf32> to vector<8x128xf32>
      %c2_65 = arith.constant 2 : index
      %c0_66 = arith.constant 0 : index
      %77 = vector.load %arg5[%c2_65, %c0_66] : memref<3x128xf32, #tpu.memory_space<vmem>>, vector<1x128xf32>
      %78 = vector.broadcast %77 : vector<1x128xf32> to vector<8x128xf32>
      %79 = arith.mulf %76, %78 : vector<8x128xf32>
      %c0_67 = arith.constant 0 : index
      %c0_68 = arith.constant 0 : index
      %80 = vector.load %arg7[%c0_67, %c0_68] : memref<8x128xf32, #tpu.memory_space<vmem>>, vector<8x128xf32>
      %c0_69 = arith.constant 0 : index
      %c5 = arith.constant 5 : index
      %81 = vector.load %arg3[%c0_69, %c5] : memref<8x9xf32, #tpu.memory_space<vmem>>, vector<8x1xf32>
      %82 = vector.broadcast %81 : vector<8x1xf32> to vector<8x128xf32>
      %83 = arith.mulf %79, %82 : vector<8x128xf32>
      %84 = arith.addf %80, %83 : vector<8x128xf32>
      %c0_70 = arith.constant 0 : index
      %c0_71 = arith.constant 0 : index
      %85 = vector.load %arg7[%c0_70, %c0_71] : memref<8x128xf32, #tpu.memory_space<vmem>>, vector<8x128xf32>
      tpu.vector_store %arg7[%c0_70, %c0_71], %84 {strides = array<i32>} : memref<8x128xf32, #tpu.memory_space<vmem>>, vector<8x128xf32>,
      %c0_72 = arith.constant 0 : index
      %c0_73 = arith.constant 0 : index
      %c15 = arith.constant 15 : index
      %86 = vector.load %arg2[%c0_72, %c0_73, %c15] : memref<1x8x256xf32, #tpu.memory_space<vmem>>, vector<1x8x128xf32>
      %87 = vector.shape_cast %86 : vector<1x8x128xf32> to vector<8x128xf32>
      %c0_74 = arith.constant 0 : index
      %c0_75 = arith.constant 0 : index
      %88 = vector.load %arg5[%c0_74, %c0_75] : memref<3x128xf32, #tpu.memory_space<vmem>>, vector<1x128xf32>
      %89 = vector.broadcast %88 : vector<1x128xf32> to vector<8x128xf32>
      %90 = arith.mulf %87, %89 : vector<8x128xf32>
      %c0_76 = arith.constant 0 : index
      %c0_77 = arith.constant 0 : index
      %91 = vector.load %arg7[%c0_76, %c0_77] : memref<8x128xf32, #tpu.memory_space<vmem>>, vector<8x128xf32>
      %c0_78 = arith.constant 0 : index
      %c6 = arith.constant 6 : index
      %92 = vector.load %arg3[%c0_78, %c6] : memref<8x9xf32, #tpu.memory_space<vmem>>, vector<8x1xf32>
      %93 = vector.broadcast %92 : vector<8x1xf32> to vector<8x128xf32>
      %94 = arith.mulf %90, %93 : vector<8x128xf32>
      %95 = arith.addf %91, %94 : vector<8x128xf32>
      %c0_79 = arith.constant 0 : index
      %c0_80 = arith.constant 0 : index
      %96 = vector.load %arg7[%c0_79, %c0_80] : memref<8x128xf32, #tpu.memory_space<vmem>>, vector<8x128xf32>
      tpu.vector_store %arg7[%c0_79, %c0_80], %95 {strides = array<i32>} : memref<8x128xf32, #tpu.memory_space<vmem>>, vector<8x128xf32>,
      %c0_81 = arith.constant 0 : index
      %c0_82 = arith.constant 0 : index
      %c16 = arith.constant 16 : index
      %97 = vector.load %arg2[%c0_81, %c0_82, %c16] : memref<1x8x256xf32, #tpu.memory_space<vmem>>, vector<1x8x128xf32>
      %98 = vector.shape_cast %97 : vector<1x8x128xf32> to vector<8x128xf32>
      %c0_83 = arith.constant 0 : index
      %c0_84 = arith.constant 0 : index
      %99 = vector.load %arg7[%c0_83, %c0_84] : memref<8x128xf32, #tpu.memory_space<vmem>>, vector<8x128xf32>
      %c0_85 = arith.constant 0 : index
      %c7 = arith.constant 7 : index
      %100 = vector.load %arg3[%c0_85, %c7] : memref<8x9xf32, #tpu.memory_space<vmem>>, vector<8x1xf32>
      %101 = vector.broadcast %100 : vector<8x1xf32> to vector<8x128xf32>
      %102 = arith.mulf %98, %101 : vector<8x128xf32>
      %103 = arith.addf %99, %102 : vector<8x128xf32>
      %c0_86 = arith.constant 0 : index
      %c0_87 = arith.constant 0 : index
      %104 = vector.load %arg7[%c0_86, %c0_87] : memref<8x128xf32, #tpu.memory_space<vmem>>, vector<8x128xf32>
      tpu.vector_store %arg7[%c0_86, %c0_87], %103 {strides = array<i32>} : memref<8x128xf32, #tpu.memory_space<vmem>>, vector<8x128xf32>,
      %c0_88 = arith.constant 0 : index
      %c0_89 = arith.constant 0 : index
      %c17 = arith.constant 17 : index
      %105 = vector.load %arg2[%c0_88, %c0_89, %c17] : memref<1x8x256xf32, #tpu.memory_space<vmem>>, vector<1x8x128xf32>
      %106 = vector.shape_cast %105 : vector<1x8x128xf32> to vector<8x128xf32>
      %c2_90 = arith.constant 2 : index
      %c0_91 = arith.constant 0 : index
      %107 = vector.load %arg5[%c2_90, %c0_91] : memref<3x128xf32, #tpu.memory_space<vmem>>, vector<1x128xf32>
      %108 = vector.broadcast %107 : vector<1x128xf32> to vector<8x128xf32>
      %109 = arith.mulf %106, %108 : vector<8x128xf32>
      %c0_92 = arith.constant 0 : index
      %c0_93 = arith.constant 0 : index
      %110 = vector.load %arg7[%c0_92, %c0_93] : memref<8x128xf32, #tpu.memory_space<vmem>>, vector<8x128xf32>
      %c0_94 = arith.constant 0 : index
      %c8 = arith.constant 8 : index
      %111 = vector.load %arg3[%c0_94, %c8] : memref<8x9xf32, #tpu.memory_space<vmem>>, vector<8x1xf32>
      %112 = vector.broadcast %111 : vector<8x1xf32> to vector<8x128xf32>
      %113 = arith.mulf %109, %112 : vector<8x128xf32>
      %114 = arith.addf %110, %113 : vector<8x128xf32>
      %c0_95 = arith.constant 0 : index
      %c0_96 = arith.constant 0 : index
      %115 = vector.load %arg7[%c0_95, %c0_96] : memref<8x128xf32, #tpu.memory_space<vmem>>, vector<8x128xf32>
      tpu.vector_store %arg7[%c0_95, %c0_96], %114 {strides = array<i32>} : memref<8x128xf32, #tpu.memory_space<vmem>>, vector<8x128xf32>,
    } else {
    }
    %c1_i32 = arith.constant 1 : i32
    %3 = arith.cmpi eq, %arg1, %c1_i32 : i32
    %4 = arith.extui %3 : i1 to i32
    %c0_i32_1 = arith.constant 0 : i32
    %5 = arith.cmpi ne, %4, %c0_i32_1 : i32
    scf.if %5 {
      %cst_8 = arith.constant 0.000000e+00 : f32
      %12 = vector.broadcast %cst_8 : f32 to vector<8x128xf32>
      %c0_9 = arith.constant 0 : index
      %c0_10 = arith.constant 0 : index
      %13 = vector.load %arg7[%c0_9, %c0_10] : memref<8x128xf32, #tpu.memory_space<vmem>>, vector<8x128xf32>
      tpu.vector_store %arg7[%c0_9, %c0_10], %12 {strides = array<i32>} : memref<8x128xf32, #tpu.memory_space<vmem>>, vector<8x128xf32>,
      %c0_11 = arith.constant 0 : index
      %c0_12 = arith.constant 0 : index
      %c111 = arith.constant 111 : index
      %14 = vector.load %arg2[%c0_11, %c0_12, %c111] : memref<1x8x256xf32, #tpu.memory_space<vmem>>, vector<1x8x128xf32>
      %15 = vector.shape_cast %14 : vector<1x8x128xf32> to vector<8x128xf32>
      %c0_13 = arith.constant 0 : index
      %c0_14 = arith.constant 0 : index
      %16 = vector.load %arg5[%c0_13, %c0_14] : memref<3x128xf32, #tpu.memory_space<vmem>>, vector<1x128xf32>
      %17 = vector.broadcast %16 : vector<1x128xf32> to vector<8x128xf32>
      %18 = arith.mulf %15, %17 : vector<8x128xf32>
      %c0_15 = arith.constant 0 : index
      %c0_16 = arith.constant 0 : index
      %19 = vector.load %arg7[%c0_15, %c0_16] : memref<8x128xf32, #tpu.memory_space<vmem>>, vector<8x128xf32>
      %c0_17 = arith.constant 0 : index
      %c0_18 = arith.constant 0 : index
      %20 = vector.load %arg3[%c0_17, %c0_18] : memref<8x9xf32, #tpu.memory_space<vmem>>, vector<8x1xf32>
      %21 = vector.broadcast %20 : vector<8x1xf32> to vector<8x128xf32>
      %22 = arith.mulf %18, %21 : vector<8x128xf32>
      %23 = arith.addf %19, %22 : vector<8x128xf32>
      %c0_19 = arith.constant 0 : index
      %c0_20 = arith.constant 0 : index
      %24 = vector.load %arg7[%c0_19, %c0_20] : memref<8x128xf32, #tpu.memory_space<vmem>>, vector<8x128xf32>
      tpu.vector_store %arg7[%c0_19, %c0_20], %23 {strides = array<i32>} : memref<8x128xf32, #tpu.memory_space<vmem>>, vector<8x128xf32>,
      %c0_21 = arith.constant 0 : index
      %c0_22 = arith.constant 0 : index
      %c112 = arith.constant 112 : index
      %25 = vector.load %arg2[%c0_21, %c0_22, %c112] : memref<1x8x256xf32, #tpu.memory_space<vmem>>, vector<1x8x128xf32>
      %26 = vector.shape_cast %25 : vector<1x8x128xf32> to vector<8x128xf32>
      %c0_23 = arith.constant 0 : index
      %c0_24 = arith.constant 0 : index
      %27 = vector.load %arg7[%c0_23, %c0_24] : memref<8x128xf32, #tpu.memory_space<vmem>>, vector<8x128xf32>
      %c0_25 = arith.constant 0 : index
      %c1 = arith.constant 1 : index
      %28 = vector.load %arg3[%c0_25, %c1] : memref<8x9xf32, #tpu.memory_space<vmem>>, vector<8x1xf32>
      %29 = vector.broadcast %28 : vector<8x1xf32> to vector<8x128xf32>
      %30 = arith.mulf %26, %29 : vector<8x128xf32>
      %31 = arith.addf %27, %30 : vector<8x128xf32>
      %c0_26 = arith.constant 0 : index
      %c0_27 = arith.constant 0 : index
      %32 = vector.load %arg7[%c0_26, %c0_27] : memref<8x128xf32, #tpu.memory_space<vmem>>, vector<8x128xf32>
      tpu.vector_store %arg7[%c0_26, %c0_27], %31 {strides = array<i32>} : memref<8x128xf32, #tpu.memory_space<vmem>>, vector<8x128xf32>,
      %c0_28 = arith.constant 0 : index
      %c0_29 = arith.constant 0 : index
      %c113 = arith.constant 113 : index
      %33 = vector.load %arg2[%c0_28, %c0_29, %c113] : memref<1x8x256xf32, #tpu.memory_space<vmem>>, vector<1x8x128xf32>
      %34 = vector.shape_cast %33 : vector<1x8x128xf32> to vector<8x128xf32>
      %c2 = arith.constant 2 : index
      %c0_30 = arith.constant 0 : index
      %35 = vector.load %arg5[%c2, %c0_30] : memref<3x128xf32, #tpu.memory_space<vmem>>, vector<1x128xf32>
      %36 = vector.broadcast %35 : vector<1x128xf32> to vector<8x128xf32>
      %37 = arith.mulf %34, %36 : vector<8x128xf32>
      %c0_31 = arith.constant 0 : index
      %c0_32 = arith.constant 0 : index
      %38 = vector.load %arg7[%c0_31, %c0_32] : memref<8x128xf32, #tpu.memory_space<vmem>>, vector<8x128xf32>
      %c0_33 = arith.constant 0 : index
      %c2_34 = arith.constant 2 : index
      %39 = vector.load %arg3[%c0_33, %c2_34] : memref<8x9xf32, #tpu.memory_space<vmem>>, vector<8x1xf32>
      %40 = vector.broadcast %39 : vector<8x1xf32> to vector<8x128xf32>
      %41 = arith.mulf %37, %40 : vector<8x128xf32>
      %42 = arith.addf %38, %41 : vector<8x128xf32>
      %c0_35 = arith.constant 0 : index
      %c0_36 = arith.constant 0 : index
      %43 = vector.load %arg7[%c0_35, %c0_36] : memref<8x128xf32, #tpu.memory_space<vmem>>, vector<8x128xf32>
      tpu.vector_store %arg7[%c0_35, %c0_36], %42 {strides = array<i32>} : memref<8x128xf32, #tpu.memory_space<vmem>>, vector<8x128xf32>,
      %c0_37 = arith.constant 0 : index
      %c0_38 = arith.constant 0 : index
      %c127 = arith.constant 127 : index
      %44 = vector.load %arg2[%c0_37, %c0_38, %c127] : memref<1x8x256xf32, #tpu.memory_space<vmem>>, vector<1x8x128xf32>
      %45 = vector.shape_cast %44 : vector<1x8x128xf32> to vector<8x128xf32>
      %c0_39 = arith.constant 0 : index
      %c0_40 = arith.constant 0 : index
      %46 = vector.load %arg5[%c0_39, %c0_40] : memref<3x128xf32, #tpu.memory_space<vmem>>, vector<1x128xf32>
      %47 = vector.broadcast %46 : vector<1x128xf32> to vector<8x128xf32>
      %48 = arith.mulf %45, %47 : vector<8x128xf32>
      %c0_41 = arith.constant 0 : index
      %c0_42 = arith.constant 0 : index
      %49 = vector.load %arg7[%c0_41, %c0_42] : memref<8x128xf32, #tpu.memory_space<vmem>>, vector<8x128xf32>
      %c0_43 = arith.constant 0 : index
      %c3 = arith.constant 3 : index
      %50 = vector.load %arg3[%c0_43, %c3] : memref<8x9xf32, #tpu.memory_space<vmem>>, vector<8x1xf32>
      %51 = vector.broadcast %50 : vector<8x1xf32> to vector<8x128xf32>
      %52 = arith.mulf %48, %51 : vector<8x128xf32>
      %53 = arith.addf %49, %52 : vector<8x128xf32>
      %c0_44 = arith.constant 0 : index
      %c0_45 = arith.constant 0 : index
      %54 = vector.load %arg7[%c0_44, %c0_45] : memref<8x128xf32, #tpu.memory_space<vmem>>, vector<8x128xf32>
      tpu.vector_store %arg7[%c0_44, %c0_45], %53 {strides = array<i32>} : memref<8x128xf32, #tpu.memory_space<vmem>>, vector<8x128xf32>,
      %c0_46 = arith.constant 0 : index
      %c0_47 = arith.constant 0 : index
      %c128 = arith.constant 128 : index
      %55 = vector.load %arg2[%c0_46, %c0_47, %c128] : memref<1x8x256xf32, #tpu.memory_space<vmem>>, vector<1x8x128xf32>
      %56 = vector.shape_cast %55 : vector<1x8x128xf32> to vector<8x128xf32>
      %c0_48 = arith.constant 0 : index
      %c0_49 = arith.constant 0 : index
      %57 = vector.load %arg7[%c0_48, %c0_49] : memref<8x128xf32, #tpu.memory_space<vmem>>, vector<8x128xf32>
      %c0_50 = arith.constant 0 : index
      %c4 = arith.constant 4 : index
      %58 = vector.load %arg3[%c0_50, %c4] : memref<8x9xf32, #tpu.memory_space<vmem>>, vector<8x1xf32>
      %59 = vector.broadcast %58 : vector<8x1xf32> to vector<8x128xf32>
      %60 = arith.mulf %56, %59 : vector<8x128xf32>
      %61 = arith.addf %57, %60 : vector<8x128xf32>
      %c0_51 = arith.constant 0 : index
      %c0_52 = arith.constant 0 : index
      %62 = vector.load %arg7[%c0_51, %c0_52] : memref<8x128xf32, #tpu.memory_space<vmem>>, vector<8x128xf32>
      tpu.vector_store %arg7[%c0_51, %c0_52], %61 {strides = array<i32>} : memref<8x128xf32, #tpu.memory_space<vmem>>, vector<8x128xf32>,
      %c0_53 = arith.constant 0 : index
      %c0_54 = arith.constant 0 : index
      %c128_55 = arith.constant 128 : index
      %63 = vector.load %arg2[%c0_53, %c0_54, %c128_55] : memref<1x8x256xf32, #tpu.memory_space<vmem>>, vector<1x8x128xf32>
      %64 = vector.shape_cast %63 : vector<1x8x128xf32> to vector<8x128xf32>
      %cst_56 = arith.constant 0.000000e+00 : f32
      %65 = vector.broadcast %cst_56 : f32 to vector<8x1xf32>
      %66 = vector.extract_strided_slice %64 {offsets = [0, 1], sizes = [8, 127], strides = [1, 1]} : vector<8x128xf32> to vector<8x127xf32>
      %67 = tpu.concatenate %66, %65 in 1 : vector<8x127xf32>, vector<8x1xf32> -> vector<8x128xf32>
      %c2_57 = arith.constant 2 : index
      %c0_58 = arith.constant 0 : index
      %68 = vector.load %arg5[%c2_57, %c0_58] : memref<3x128xf32, #tpu.memory_space<vmem>>, vector<1x128xf32>
      %69 = vector.broadcast %68 : vector<1x128xf32> to vector<8x128xf32>
      %70 = arith.mulf %67, %69 : vector<8x128xf32>
      %c0_59 = arith.constant 0 : index
      %c0_60 = arith.constant 0 : index
      %71 = vector.load %arg7[%c0_59, %c0_60] : memref<8x128xf32, #tpu.memory_space<vmem>>, vector<8x128xf32>
      %c0_61 = arith.constant 0 : index
      %c5 = arith.constant 5 : index
      %72 = vector.load %arg3[%c0_61, %c5] : memref<8x9xf32, #tpu.memory_space<vmem>>, vector<8x1xf32>
      %73 = vector.broadcast %72 : vector<8x1xf32> to vector<8x128xf32>
      %74 = arith.mulf %70, %73 : vector<8x128xf32>
      %75 = arith.addf %71, %74 : vector<8x128xf32>
      %c0_62 = arith.constant 0 : index
      %c0_63 = arith.constant 0 : index
      %76 = vector.load %arg7[%c0_62, %c0_63] : memref<8x128xf32, #tpu.memory_space<vmem>>, vector<8x128xf32>
      tpu.vector_store %arg7[%c0_62, %c0_63], %75 {strides = array<i32>} : memref<8x128xf32, #tpu.memory_space<vmem>>, vector<8x128xf32>,
      %c0_64 = arith.constant 0 : index
      %c0_65 = arith.constant 0 : index
      %c128_66 = arith.constant 128 : index
      %77 = vector.load %arg2[%c0_64, %c0_65, %c128_66] : memref<1x8x256xf32, #tpu.memory_space<vmem>>, vector<1x8x128xf32>
      %78 = vector.shape_cast %77 : vector<1x8x128xf32> to vector<8x128xf32>
      %cst_67 = arith.constant 0.000000e+00 : f32
      %79 = vector.broadcast %cst_67 : f32 to vector<8x15xf32>
      %80 = vector.extract_strided_slice %78 {offsets = [0, 15], sizes = [8, 113], strides = [1, 1]} : vector<8x128xf32> to vector<8x113xf32>
      %81 = tpu.concatenate %80, %79 in 1 : vector<8x113xf32>, vector<8x15xf32> -> vector<8x128xf32>
      %c0_68 = arith.constant 0 : index
      %c0_69 = arith.constant 0 : index
      %82 = vector.load %arg5[%c0_68, %c0_69] : memref<3x128xf32, #tpu.memory_space<vmem>>, vector<1x128xf32>
      %83 = vector.broadcast %82 : vector<1x128xf32> to vector<8x128xf32>
      %84 = arith.mulf %81, %83 : vector<8x128xf32>
      %c0_70 = arith.constant 0 : index
      %c0_71 = arith.constant 0 : index
      %85 = vector.load %arg7[%c0_70, %c0_71] : memref<8x128xf32, #tpu.memory_space<vmem>>, vector<8x128xf32>
      %c0_72 = arith.constant 0 : index
      %c6 = arith.constant 6 : index
      %86 = vector.load %arg3[%c0_72, %c6] : memref<8x9xf32, #tpu.memory_space<vmem>>, vector<8x1xf32>
      %87 = vector.broadcast %86 : vector<8x1xf32> to vector<8x128xf32>
      %88 = arith.mulf %84, %87 : vector<8x128xf32>
      %89 = arith.addf %85, %88 : vector<8x128xf32>
      %c0_73 = arith.constant 0 : index
      %c0_74 = arith.constant 0 : index
      %90 = vector.load %arg7[%c0_73, %c0_74] : memref<8x128xf32, #tpu.memory_space<vmem>>, vector<8x128xf32>
      tpu.vector_store %arg7[%c0_73, %c0_74], %89 {strides = array<i32>} : memref<8x128xf32, #tpu.memory_space<vmem>>, vector<8x128xf32>,
      %c0_75 = arith.constant 0 : index
      %c0_76 = arith.constant 0 : index
      %c128_77 = arith.constant 128 : index
      %91 = vector.load %arg2[%c0_75, %c0_76, %c128_77] : memref<1x8x256xf32, #tpu.memory_space<vmem>>, vector<1x8x128xf32>
      %92 = vector.shape_cast %91 : vector<1x8x128xf32> to vector<8x128xf32>
      %cst_78 = arith.constant 0.000000e+00 : f32
      %93 = vector.broadcast %cst_78 : f32 to vector<8x16xf32>
      %94 = vector.extract_strided_slice %92 {offsets = [0, 16], sizes = [8, 112], strides = [1, 1]} : vector<8x128xf32> to vector<8x112xf32>
      %95 = tpu.concatenate %94, %93 in 1 : vector<8x112xf32>, vector<8x16xf32> -> vector<8x128xf32>
      %c0_79 = arith.constant 0 : index
      %c0_80 = arith.constant 0 : index
      %96 = vector.load %arg7[%c0_79, %c0_80] : memref<8x128xf32, #tpu.memory_space<vmem>>, vector<8x128xf32>
      %c0_81 = arith.constant 0 : index
      %c7 = arith.constant 7 : index
      %97 = vector.load %arg3[%c0_81, %c7] : memref<8x9xf32, #tpu.memory_space<vmem>>, vector<8x1xf32>
      %98 = vector.broadcast %97 : vector<8x1xf32> to vector<8x128xf32>
      %99 = arith.mulf %95, %98 : vector<8x128xf32>
      %100 = arith.addf %96, %99 : vector<8x128xf32>
      %c0_82 = arith.constant 0 : index
      %c0_83 = arith.constant 0 : index
      %101 = vector.load %arg7[%c0_82, %c0_83] : memref<8x128xf32, #tpu.memory_space<vmem>>, vector<8x128xf32>
      tpu.vector_store %arg7[%c0_82, %c0_83], %100 {strides = array<i32>} : memref<8x128xf32, #tpu.memory_space<vmem>>, vector<8x128xf32>,
      %c0_84 = arith.constant 0 : index
      %c0_85 = arith.constant 0 : index
      %c128_86 = arith.constant 128 : index
      %102 = vector.load %arg2[%c0_84, %c0_85, %c128_86] : memref<1x8x256xf32, #tpu.memory_space<vmem>>, vector<1x8x128xf32>
      %103 = vector.shape_cast %102 : vector<1x8x128xf32> to vector<8x128xf32>
      %cst_87 = arith.constant 0.000000e+00 : f32
      %104 = vector.broadcast %cst_87 : f32 to vector<8x17xf32>
      %105 = vector.extract_strided_slice %103 {offsets = [0, 17], sizes = [8, 111], strides = [1, 1]} : vector<8x128xf32> to vector<8x111xf32>
      %106 = tpu.concatenate %105, %104 in 1 : vector<8x111xf32>, vector<8x17xf32> -> vector<8x128xf32>
      %c2_88 = arith.constant 2 : index
      %c0_89 = arith.constant 0 : index
      %107 = vector.load %arg5[%c2_88, %c0_89] : memref<3x128xf32, #tpu.memory_space<vmem>>, vector<1x128xf32>
      %108 = vector.broadcast %107 : vector<1x128xf32> to vector<8x128xf32>
      %109 = arith.mulf %106, %108 : vector<8x128xf32>
      %c0_90 = arith.constant 0 : index
      %c0_91 = arith.constant 0 : index
      %110 = vector.load %arg7[%c0_90, %c0_91] : memref<8x128xf32, #tpu.memory_space<vmem>>, vector<8x128xf32>
      %c0_92 = arith.constant 0 : index
      %c8 = arith.constant 8 : index
      %111 = vector.load %arg3[%c0_92, %c8] : memref<8x9xf32, #tpu.memory_space<vmem>>, vector<8x1xf32>
      %112 = vector.broadcast %111 : vector<8x1xf32> to vector<8x128xf32>
      %113 = arith.mulf %109, %112 : vector<8x128xf32>
      %114 = arith.addf %110, %113 : vector<8x128xf32>
      %c0_93 = arith.constant 0 : index
      %c0_94 = arith.constant 0 : index
      %115 = vector.load %arg7[%c0_93, %c0_94] : memref<8x128xf32, #tpu.memory_space<vmem>>, vector<8x128xf32>
      tpu.vector_store %arg7[%c0_93, %c0_94], %114 {strides = array<i32>} : memref<8x128xf32, #tpu.memory_space<vmem>>, vector<8x128xf32>,
    } else {
    }
    %c0 = arith.constant 0 : index
    %c0_2 = arith.constant 0 : index
    %6 = vector.load %arg7[%c0, %c0_2] : memref<8x128xf32, #tpu.memory_space<vmem>>, vector<8x128xf32>
    %c0_3 = arith.constant 0 : index
    %c0_4 = arith.constant 0 : index
    %7 = vector.load %arg4[%c0_3, %c0_4] : memref<16x8xf32, #tpu.memory_space<vmem>>, vector<16x8xf32>
    %cst = arith.constant dense<0.000000e+00> : vector<16x128xf32>
    %8 = tpu.matmul %7, %6, %cst {dimension_numbers = #tpu.dot_dimension_numbers<[1], [0], [0], [1], [0, 0, 1, 1], [], []>} : vector<16x8xf32>, vector<8x128xf32>, vector<16x128xf32> -> vector<16x128xf32>
    %c0_5 = arith.constant 0 : index
    %c0_6 = arith.constant 0 : index
    %c0_7 = arith.constant 0 : index
    %9 = vector.load %arg6[%c0_5, %c0_6, %c0_7] : memref<1x16x128xf32, #tpu.memory_space<vmem>>, vector<1x16x128xf32>
    %10 = vector.shape_cast %9 : vector<1x16x128xf32> to vector<16x128xf32>
    %11 = vector.shape_cast %8 : vector<16x128xf32> to vector<1x16x128xf32>
    tpu.vector_store %arg6[%c0_5, %c0_6, %c0_7], %11 {strides = array<i32>} : memref<1x16x128xf32, #tpu.memory_space<vmem>>, vector<1x16x128xf32>,
    return
  }
  func.func @transform_0(%arg0: i32, %arg1: i32) -> (i32, i32, i32) {
    %c0_i32 = arith.constant 0 : i32
    %c0_i32_0 = arith.constant 0 : i32
    %c0_i32_1 = arith.constant 0 : i32
    return %arg0, %c0_i32, %c0_i32_0 : i32, i32, i32
  }
  func.func @transform_1(%arg0: i32, %arg1: i32) -> (i32, i32) {
    %c0_i32 = arith.constant 0 : i32
    %c0_i32_0 = arith.constant 0 : i32
    %c0_i32_1 = arith.constant 0 : i32
    return %c0_i32, %c0_i32_0 : i32, i32
  }
  func.func @transform_2(%arg0: i32, %arg1: i32) -> (i32, i32) {
    %c0_i32 = arith.constant 0 : i32
    %c0_i32_0 = arith.constant 0 : i32
    %c0_i32_1 = arith.constant 0 : i32
    return %c0_i32, %c0_i32_0 : i32, i32
  }
  func.func @transform_3(%arg0: i32, %arg1: i32) -> (i32, i32) {
    %c0_i32 = arith.constant 0 : i32
    %c0_i32_0 = arith.constant 0 : i32
    %c0_i32_1 = arith.constant 0 : i32
    return %c0_i32, %c0_i32_0 : i32, i32
  }
  func.func @transform_4(%arg0: i32, %arg1: i32) -> (i32, i32, i32) {
    %c0_i32 = arith.constant 0 : i32
    %c0_i32_0 = arith.constant 0 : i32
    return %arg0, %c0_i32, %arg1 : i32, i32, i32
  }
}

</mosaic_0001>

<bundles_post_ra>
// kernel: tpu_custom_call.1
= control target key start
LH: loop header
LB: loop body
LE: loop exit
PB: predicated region body
PF: predicated region fallthrough
CT: control target
= control target key end

     0   :  { %9 = vsyncpa [#allocation4], 0  ;;  %s1276_s0 = inlined_call_operand.vmem [shape: f32[1,8,256], index: 0, kind: input, shape index: {}]   ;;  %s1277_s1 = inlined_call_operand.vmem [shape: f32[8,9], index: 1, kind: input, shape index: {}]   ;;  %s1278_s2 = inlined_call_operand.vmem [shape: f32[16,8], index: 2, kind: input, shape index: {}]   ;;  %s1279_s3 = inlined_call_operand.hbm [shape: f32[3,128], index: 3, kind: input, shape index: {}]   ;;  %s1280_s4 = inlined_call_operand.hbm [shape: f32[1,16,256], index: 4, kind: output, shape index: {}]  }
   0x1   :  { %10 = vsyncpa [#allocation5], 0 }
   0x2   :  { %12 = vsyncpa [#allocation5 + $0x1], 0  ;;  %s1105_s15 = smov 0   ;;  %s1107_s16 = smov 0  }
   0x3   :  { %s1109_s17 = smov 0   ;;  %s1111_s18 = smov 0  }
   0x4   :  { %s1113_s19 = smov 0   ;;  %s1115_s20 = smov 0  }
   0x5 LB: > { %s774_s21 = sadd.s32 4294967295, %s1040_s20   ;;  %s775_s22 = sadd.s32 4294967294, %s1040_s20   ;;  %s1040_s20 = sphi %s1115_s20, %s18_s20   ;;  %s1036_s19 = sphi %s1113_s19, %s1287_s19   ;;  %s1032_s18 = sphi %s1111_s18, %s1286_s18   ;;  %s1028_s17 = sphi %s1109_s17, %s1285_s17   ;;  %s1024_s16 = sphi %s1107_s16, %s1284_s16   ;;  %s1020_s15 = sphi %s1105_s15, %s1283_s15  }
   0x6   : > { %s27_s23 = sadd.s32 1, %s1036_s19  ;;  %s128_s24 = sadd.s32 1, %s1028_s17 }
   0x7   : > { %p28_p0 = scmp.ge.s32.totalorder %s27_s23, 2  ;;  %p138_p1 = scmp.ne.s32.totalorder %s1028_s17, %s1024_s16 }
   0x8   : > { %p139_p2 = scmp.eq.s32.totalorder %s774_s21, 1  ;;  %p144_p3 = scmp.ne.s32.totalorder %s1024_s16, %s1020_s15 }
   0x9   : > { %s1289_s23 = smov (%p28_p0, %s27_s23), 0  ;;  %p145_p5 = scmp.eq.s32.totalorder %s775_s22, 1 }
   0xa   : > { %p1145_p4 = por %p139_p2, %p138_p1  ;;  %s124_s26 = ssub.s32 %s1036_s19, %s1289_s23 }
   0xb   : > { %p776_p6 = scmp.ge.s32.totalorder %s1040_s20, 1  ;;  %p126_p7 = scmp.eq.s32.totalorder %s124_s26, 0 }
   0xc   : > { %p1152_p8 = por %p145_p5, %p144_p3  ;;  %p152_p9 = scmp.lt.s32.totalorder %s1040_s20, 3 }
   0xd   : > { %s1158_s28 = scalar_select %p126_p7, %s1028_s17, %s128_s24  }
   0xe   : > { %p153_p10 = pnand %p776_p6, %p152_p9  ;;  %p805_p11 = scmp.eq.s32.totalorder %s774_s21, 0 }
   0xf   : > { %s178_s5 = sshll.u32 %s1279_s3, 4  ;;  %s1042_s6 = smov [#allocation3]   ;;  %s179_s5 = int_to_ptr.hbm [resolvable:$true] %s178_s5 }
  0x10   : > { %p797_p12 = pneg %p153_p10  ;;  %s180_s7 = sshll.u32 %s1042_s6, 4  ;;  %s181_s7 = int_to_ptr.vmem [resolvable:$true] %s180_s7 }
  0x11   : > { %193 = sbr.rel (%p153_p10) target bundleno = 729 (0x2d9), region = 36 }
  0x12   : > { %p798_p13 = pnand %p805_p11, %p797_p12 }
  0x14   : > { %800 = dma.hbm_to_vmem [thread:$0]  (!%p798_p13), %s179_s5, 64, %s181_s7, [#allocation4]  }
  0x16   : > { %1011 = dma.done.wait (%p805_p11), [#allocation4], 64  }
  0x17   : > { %1013 = vsyncadd (%p805_p11), [#allocation4], 4294967232  ;;  %s217_s8 = sand.u32 1, %s1024_s16   ;;  %p782_p0 = scmp.ne.s32.totalorder %s1032_s18, 0 }
  0x18   : > { %s781_s9 = sshll.u32 %s217_s8, 4  ;;  %s1043_s13 = smov (!%p782_p0), 17  }
  0x19   : > { %s1166_s10 = scalar_lea.vmem [#allocation6], %s781_s9  ;;  %228 = sbr.rel (%p782_p0) target bundleno = 301 (0x12d), region = 44 }
  0x1a   : > { %s1046_s22 = smov (!%p782_p0), 1   ;;  %s1049_s24 = smov (!%p782_p0), 16  }
  0x1b   : > { %s1051_s26 = smov (!%p782_p0), 15   ;;  %s1056_s5 = smov (!%p782_p0), 127  }
  0x1c   : > { %s1057_s6 = smov (!%p782_p0), 112   ;;  %s1058_s7 = smov (!%p782_p0), 113  }
  0x1d   : > { %s1059_s9 = smov (!%p782_p0), 111  }
  0x1e   : > { %v1172_v0 = vld [vmem:[%s1276_s0] sm:$0xff]  ;;  %v906_v1 = vld [vmem:[#allocation3 + $0x2] ss:$0 sm:$0xff]  ;;  %v1044_v2 = vmov 1   ;;  %v1045_v4 = vmov 0   ;;  %v1047_v5 = vmov 6  }
  0x1f   : > { %232 = vrot.lane.b32.xlu0 %v1172_v0, %s1043_s13  ;;  %897 = vset.pattern.permute.xlu2 %v1044_v2  ;;  %v258_v3 = vld [vmem:[%s1277_s1] sm:$0xff]  ;;  %v1048_v6 = vmov 5   ;;  %v907_v7 = vld [vmem:[#allocation3] ss:$0 sm:$0xff]  ;;  %v1050_v8 = vmov 2   ;;  %v1052_v9 = vmov 7  }
  0x20   : > { %261 = vperm.xlu2 %897, %v258_v3   ;;  %896 = vset.pattern.permute.xlu0 %v1045_v4  ;;  %v908_v10 = vld [vmem:[#allocation3 + $0x2] ss:$0 sm:$0xff]  ;;  %v1053_v11 = vmov 8   ;;  %v1054_v12 = vmov 3   ;;  %v1055_v13 = vmov 4   ;;  %vm235_vm0 = vcmask 138240  }
  0x21   : > { %323 = vrot.lane.b32.xlu1 %v906_v1, %s1046_s22  ;;  %v349_v17 = vld [vmem:[%s1276_s0 + $0x8] sm:$0xff]  ;;  %vm255_vm1 = vcmask 130048   ;;  %vm272_vm2 = vcmask 121856   ;;  %vm292_vm3 = vcmask 7168   ;;  %vm343_vm4 = vcmask 1039360  }
  0x22   : > { %900 = vset.pattern.permute.xlu1 %v1047_v5  ;;  %v909_v19 = vld [vmem:[#allocation3] ss:$0 sm:$0xff]  ;;  %v911_v36 = vld [vmem:[#allocation3 + $0x2] ss:$0 sm:$0xff]  ;;  %vm373_vm5 = vcmask 924672   ;;  %vm395_vm6 = vcmask 916480  }
  0x23   : > { %v910_v53 = vld [vmem:[#allocation3] ss:$0 sm:$0xff]  ;;  %vm425_vm7 = vcmask 908288  }
  0x27   : > { %244 = vperm.xlu0 %896, %v258_v3  }
  0x28   : > { %898 = vset.pattern.permute.xlu2 %v1048_v6 }
  0x29   : > { %252 = vrot.lane.b32.xlu1 %v1172_v0, %s1049_s24  ;;  %332 = vperm.xlu2 %898, %v258_v3  }
  0x2f   : > { %899 = vset.pattern.permute.xlu0 %v1050_v8 }
  0x30   : > { %281 = vperm.xlu0 %899, %v258_v3  }
  0x31   : > { %269 = vrot.lane.b32.xlu1 %v1172_v0, %s1051_s26  ;;  %353 = vrot.lane.b32.xlu2 %v907_v7, %s1051_s26 }
  0x32   : > { %902 = vset.pattern.permute.xlu2 %v1052_v9 }
  0x38   : > { %405 = vrot.lane.b32.xlu0 %v908_v10, %s1043_s13 }
  0x39   : > { %362 = vperm.xlu1 %900, %v258_v3   ;;  %289 = vrot.lane.b32.xlu2 %v1172_v0, %s1046_s22 }
  0x3a   : > { %905 = vset.pattern.permute.xlu0 %v1053_v11 }
  0x41   : > { %901 = vset.pattern.permute.xlu1 %v1054_v12  ;;  %384 = vperm.xlu2 %902, %v258_v3  }
  0x42   : > { %301 = vperm.xlu1 %901, %v258_v3  }
  0x49   : > { %904 = vset.pattern.permute.xlu2 %v1053_v11 }
  0x4a   : > { %903 = vset.pattern.permute.xlu1 %v1055_v13  ;;  %414 = vperm.xlu2 %904, %v258_v3  }
  0x4b   : > { %312 = vperm.xlu1 %903, %v258_v3  }
  0x7a   : > { %v262_v14 = vpop.permute.xlu2 %261 }
  0x83   : > { %v333_v15 = vpop.permute.xlu2 %332 }
  0x8b   : > { %v354_v16 = vpop.permute.xlu2 %353 }
  0x8c   : > { %v356_v43 = vmul.f32 %v354_v16, %v1172_v0  ;;  %v357_v44 = vmul.f32 %v354_v16, %v349_v17 }
  0x91   : > { %v233_v18 = vpop.permute.xlu0 %232 }
  0x92   : > { %v236_v20 = vsel %vm235_vm0, 0.0, %v233_v18 }
  0x93   : > { %v324_v21 = vpop.permute.xlu1 %323  ;;  %v290_v22 = vpop.permute.xlu2 %289  ;;  %v239_v25 = vmul.f32 %v909_v19, %v236_v20 }
  0x94   : > { %v326_v23 = vmul.f32 %v324_v21, %v1172_v0  ;;  %v327_v24 = vmul.f32 %v349_v17, %v324_v21  ;;  %v293_v54 = vsel %vm292_vm3, 0.0, %v290_v22 }
  0x95   : > { %v296_v56 = vmul.f32 %v910_v53, %v293_v54 }
  0x96   : > { %v335_v26 = vmul.f32 %v333_v15, %v326_v23  ;;  %v336_v27 = vmul.f32 %v333_v15, %v327_v24 }
  0x98   : > { %341 = vrot.lane.b32.xlu1 %v336_v27, %s1056_s5  ;;  %339 = vrot.lane.b32.xlu0 %v335_v26, %s1056_s5 }
  0x99   : > { %v245_v28 = vpop.permute.xlu0 %244 }
  0x9a   : > { %v247_v29 = vmul.f32 %v245_v28, %v239_v25 }
  0x9b   : > { %v253_v30 = vpop.permute.xlu1 %252  ;;  %v385_v31 = vpop.permute.xlu2 %384 }
  0x9c   : > { %v256_v32 = vsel %vm255_vm1, 0.0, %v253_v30  ;;  %v387_v33 = vmul.f32 %v385_v31, %v1172_v0  ;;  %v388_v57 = vmul.f32 %v385_v31, %v349_v17 }
  0x9d   : > { %v264_v34 = vmul.f32 %v262_v14, %v256_v32 }
  0x9f   : > { %v265_v35 = vadd.f32 %v264_v34, %v247_v29 }
  0xa0   : > { %391 = vrot.lane.b32.xlu1 %v387_v33, %s1057_s6 }
  0xa2   : > { %v282_v37 = vpop.permute.xlu0 %281 }
  0xa3   : > { %v270_v38 = vpop.permute.xlu1 %269 }
  0xa4   : > { %v273_v39 = vsel %vm272_vm2, 0.0, %v270_v38  ;;  %v415_v46 = vpop.permute.xlu2 %414 }
  0xa5   : > { %v276_v40 = vmul.f32 %v911_v36, %v273_v39 }
  0xa7   : > { %v284_v41 = vmul.f32 %v282_v37, %v276_v40 }
  0xa9   : > { %v285_v42 = vadd.f32 %v284_v41, %v265_v35 }
  0xaa   : > { %v406_v45 = vpop.permute.xlu0 %405 }
  0xab   : > { %v363_v47 = vpop.permute.xlu1 %362  ;;  %v409_v48 = vmul.f32 %v406_v45, %v349_v17  ;;  %v408_v52 = vmul.f32 %v406_v45, %v1172_v0 }
  0xac   : > { %v365_v49 = vmul.f32 %v363_v47, %v356_v43  ;;  %v366_v50 = vmul.f32 %v363_v47, %v357_v44 }
  0xad   : > { %v418_v51 = vmul.f32 %v415_v46, %v409_v48  ;;  %v417_v55 = vmul.f32 %v415_v46, %v408_v52 }
  0xae   : > { %369 = vrot.lane.b32.xlu2 %v365_v49, %s1058_s7  ;;  %371 = vrot.lane.b32.xlu0 %v366_v50, %s1058_s7 }
  0xaf   : > { %423 = vrot.lane.b32.xlu1 %v418_v51, %s1059_s9 }
  0xb4   : > { %v302_v58 = vpop.permute.xlu1 %301 }
  0xb5   : > { %v304_v59 = vmul.f32 %v302_v58, %v296_v56 }
  0xb6   : > { %393 = vrot.lane.b32.xlu2 %v388_v57, %s1057_s6  ;;  %421 = vrot.lane.b32.xlu0 %v417_v55, %s1059_s9 }
  0xb7   : > { %v305_v60 = vadd.f32 %v304_v59, %v285_v42 }
  0xbd   : > { %v313_v61 = vpop.permute.xlu1 %312 }
  0xbe   : > { %v315_v1 = vmul.f32 %v313_v61, %v1172_v0 }
  0xc0   : > { %v316_v5 = vadd.f32 %v315_v1, %v305_v60 }
 0x108   : > { %v370_v2 = vpop.permute.xlu2 %369 }
 0x10a   : > { %v342_v62 = vpop.permute.xlu1 %341  ;;  %v340_v63 = vpop.permute.xlu0 %339 }
 0x10b   : > { %v344_v4 = vsel %vm343_vm4, %v340_v63, %v342_v62 }
 0x10c   : > { %v346_v8 = vadd.f32 %v344_v4, %v316_v5 }
 0x110   : > { %v394_v10 = vpop.permute.xlu2 %393 }
 0x112   : > { %v392_v3 = vpop.permute.xlu1 %391 }
 0x113   : > { %v396_v12 = vsel %vm395_vm6, %v392_v3, %v394_v10 }
 0x120   : > { %v372_v6 = vpop.permute.xlu0 %371 }
 0x121   : > { %v374_v7 = vsel %vm373_vm5, %v370_v2, %v372_v6  ;;  %v424_v11 = vpop.permute.xlu1 %423 }
 0x122   : > { %v376_v9 = vadd.f32 %v374_v7, %v346_v8 }
 0x124   : > { %v398_v14 = vadd.f32 %v396_v12, %v376_v9 }
 0x128   : > { %v422_v13 = vpop.permute.xlu0 %421 }
 0x129   : > { %v426_v15 = vsel %vm425_vm7, %v422_v13, %v424_v11 }
 0x12a   : > { %v428_v16 = vadd.f32 %v426_v15, %v398_v14 }
 0x12c   : > { %429 = vst [vmem:[#allocation2] sm:$0xff] %v428_v16 }
 0x12d PF: > { %p783_p1 = scmp.ne.s32.totalorder %s1032_s18, 1 }
 0x12e   : > { %s1061_s13 = smov (!%p783_p1), 111   ;;  %s1064_s14 = smov (!%p783_p1), 113  }
 0x12f   : > { %433 = sbr.rel (%p783_p1) target bundleno = 589 (0x24d), region = 48  ;;  %s1066_s21 = smov (!%p783_p1), 127  }
 0x130   : > { %s1069_s26 = smov (!%p783_p1), 16   ;;  %s1070_s5 = smov (!%p783_p1), 17  }
 0x131   : > { %s1071_s6 = smov (!%p783_p1), 15   ;;  %s1073_s7 = smov (!%p783_p1), 1  }
 0x132   : > { %s1075_s9 = smov (!%p783_p1), 112  }
 0x134   : > { %v1195_v0 = vld [vmem:[%s1277_s1] sm:$0xff]  ;;  %v922_v17 = vld [vmem:[#allocation3] ss:$0 sm:$0xff]  ;;  %v1060_v18 = vmov 1   ;;  %v1062_v19 = vmov 0   ;;  %v1063_v20 = vmov 2  }
 0x135   : > { %913 = vset.pattern.permute.xlu1 %v1060_v18  ;;  %440 = vrot.lane.b32.xlu0 %v922_v17, %s1061_s13  ;;  %v923_v21 = vld [vmem:[#allocation3 + $0x2] ss:$0 sm:$0xff]  ;;  %v924_v22 = vld [vmem:[#allocation3] ss:$0 sm:$0xff]  ;;  %v1065_v23 = vmov 3   ;;  %v1067_v24 = vmov 4  }
 0x136   : > { %471 = vperm.xlu1 %913, %v1195_v0   ;;  %912 = vset.pattern.permute.xlu0 %v1062_v19  ;;  %v1068_v25 = vmov 5   ;;  %v465_v26 = vld [vmem:[%s1276_s0] sm:$0xff]  ;;  %v1210_v30 = vld [vmem:[%s1276_s0 + $0x8] sm:$0xff]  ;;  %v1072_v41 = vmov 6   ;;  %v1074_v50 = vmov 8   ;;  %v1076_v51 = vmov 7  }
 0x137   : > { %914 = vset.pattern.permute.xlu2 %v1063_v20  ;;  %vm460_vm8 = vcmask 138240   ;;  %vm482_vm9 = vcmask 130048   ;;  %vm512_vm10 = vcmask 121856   ;;  %vm542_vm11 = vcmask 7168   ;;  %v925_v5 = vld [vmem:[#allocation3 + $0x2] ss:$0 sm:$0xff] }
 0x138   : > { %501 = vperm.xlu2 %914, %v1195_v0   ;;  %vm563_vm12 = vcmask 1039360   ;;  %vm583_vm13 = vcmask 924672   ;;  %v926_v10 = vld [vmem:[#allocation3] ss:$0 sm:$0xff]  ;;  %vm603_vm14 = vcmask 916480   ;;  %vm620_vm15 = vcmask 908288  }
 0x13d   : > { %449 = vperm.xlu0 %912, %v1195_v0  }
 0x13e   : > { %492 = vrot.lane.b32.xlu1 %v923_v21, %s1064_s14 }
 0x13f   : > { %915 = vset.pattern.permute.xlu1 %v1065_v23 }
 0x140   : > { %522 = vrot.lane.b32.xlu2 %v924_v22, %s1066_s21  ;;  %v927_v22 = vld [vmem:[#allocation3 + $0x2] ss:$0 sm:$0xff] }
 0x141   : > { %918 = vset.pattern.permute.xlu2 %v1072_v41 }
 0x145   : > { %917 = vset.pattern.permute.xlu0 %v1068_v25 }
 0x146   : > { %531 = vperm.xlu1 %915, %v1195_v0  }
 0x14e   : > { %916 = vset.pattern.permute.xlu1 %v1067_v24 }
 0x192   : > { %v502_v33 = vpop.permute.xlu2 %501 }
 0x19a   : > { %v523_v42 = vpop.permute.xlu2 %522 }
 0x19b   : > { %v525_v45 = vmul.f32 %v523_v42, %v465_v26  ;;  %v526_v46 = vmul.f32 %v523_v42, %v1210_v30 }
 0x1a7   : > { %v441_v28 = vpop.permute.xlu0 %440 }
 0x1a8   : > { %v472_v27 = vpop.permute.xlu1 %471  ;;  %v443_v31 = vmul.f32 %v465_v26, %v441_v28  ;;  %v444_v32 = vmul.f32 %v1210_v30, %v441_v28 }
 0x1a9   : > { %v474_v29 = vmul.f32 %v472_v27, %v465_v26  ;;  %v475_v43 = vmul.f32 %v472_v27, %v1210_v30 }
 0x1ab   : > { %478 = vrot.lane.b32.xlu1 %v474_v29, %s1069_s26 }
 0x1af   : > { %v450_v34 = vpop.permute.xlu0 %449 }
 0x1b0   : > { %v493_v35 = vpop.permute.xlu1 %492  ;;  %v452_v36 = vmul.f32 %v450_v34, %v443_v31  ;;  %v453_v37 = vmul.f32 %v450_v34, %v444_v32 }
 0x1b1   : > { %v496_v38 = vmul.f32 %v493_v35, %v1210_v30  ;;  %v495_v40 = vmul.f32 %v493_v35, %v465_v26 }
 0x1b2   : > { %458 = vrot.lane.b32.xlu0 %v453_v37, %s1070_s5  ;;  %456 = vrot.lane.b32.xlu2 %v452_v36, %s1070_s5 }
 0x1b3   : > { %v505_v39 = vmul.f32 %v502_v33, %v496_v38  ;;  %v504_v44 = vmul.f32 %v502_v33, %v495_v40 }
 0x1b5   : > { %510 = vrot.lane.b32.xlu1 %v505_v39, %s1071_s6 }
 0x1b8   : > { %v532_v47 = vpop.permute.xlu1 %531 }
 0x1b9   : > { %v534_v48 = vmul.f32 %v532_v47, %v525_v45  ;;  %v535_v49 = vmul.f32 %v532_v47, %v526_v46 }
 0x1ba   : > { %508 = vrot.lane.b32.xlu0 %v504_v44, %s1071_s6  ;;  %480 = vrot.lane.b32.xlu2 %v475_v43, %s1069_s26 }
 0x1bd   : > { %552 = vperm.xlu1 %916, %v1195_v0  }
 0x1c2   : > { %540 = vrot.lane.b32.xlu0 %v535_v49, %s1073_s7  ;;  %538 = vrot.lane.b32.xlu2 %v534_v48, %s1073_s7 }
 0x1c5   : > { %580 = vrot.lane.b32.xlu1 %v1210_v30, %s1064_s14 }
 0x1c6   : > { %920 = vset.pattern.permute.xlu1 %v1074_v50 }
 0x1ca   : > { %572 = vperm.xlu0 %917, %v1195_v0   ;;  %560 = vrot.lane.b32.xlu2 %v1210_v30, %s1066_s21 }
 0x1cd   : > { %600 = vrot.lane.b32.xlu1 %v1210_v30, %s1075_s9 }
 0x1d2   : > { %617 = vrot.lane.b32.xlu0 %v1210_v30, %s1061_s13  ;;  %592 = vperm.xlu2 %918, %v1195_v0  }
 0x1d3   : > { %921 = vset.pattern.permute.xlu0 %v1074_v50 }
 0x1d5   : > { %629 = vperm.xlu1 %920, %v1195_v0  }
 0x1da   : > { %919 = vset.pattern.permute.xlu2 %v1076_v51 }
 0x1db   : > { %609 = vperm.xlu2 %919, %v1195_v0  }
 0x20c   : > { %v457_v52 = vpop.permute.xlu2 %456 }
 0x214   : > { %v481_v53 = vpop.permute.xlu2 %480 }
 0x21c   : > { %v539_v56 = vpop.permute.xlu2 %538 }
 0x21d   : > { %v479_v54 = vpop.permute.xlu1 %478 }
 0x21e   : > { %v483_v63 = vsel %vm482_vm9, %v479_v54, %v481_v53 }
 0x224   : > { %v459_v55 = vpop.permute.xlu0 %458  ;;  %v561_v59 = vpop.permute.xlu2 %560 }
 0x225   : > { %v461_v61 = vsel %vm460_vm8, %v457_v52, %v459_v55  ;;  %v564_v8 = vsel %vm563_vm12, %v561_v59, 0.0 }
 0x226   : > { %v485_v2 = vadd.f32 %v483_v63, %v461_v61  ;;  %v567_v11 = vmul.f32 %v925_v5, %v564_v8 }
 0x227   : > { %v511_v57 = vpop.permute.xlu1 %510 }
 0x22c   : > { %v509_v58 = vpop.permute.xlu0 %508  ;;  %v593_v6 = vpop.permute.xlu2 %592 }
 0x22d   : > { %v513_v1 = vsel %vm512_vm10, %v509_v58, %v511_v57 }
 0x22e   : > { %v515_v7 = vadd.f32 %v513_v1, %v485_v2 }
 0x22f   : > { %v553_v60 = vpop.permute.xlu1 %552 }
 0x230   : > { %v555_v13 = vmul.f32 %v553_v60, %v1210_v30 }
 0x234   : > { %v541_v62 = vpop.permute.xlu0 %540 }
 0x235   : > { %v543_v4 = vsel %vm542_vm11, %v539_v56, %v541_v62  ;;  %v610_v20 = vpop.permute.xlu2 %609 }
 0x236   : > { %v545_v9 = vadd.f32 %v543_v4, %v515_v7 }
 0x237   : > { %v581_v3 = vpop.permute.xlu1 %580 }
 0x238   : > { %v584_v12 = vsel %vm583_vm13, %v581_v3, 0.0  ;;  %v556_v16 = vadd.f32 %v555_v13, %v545_v9 }
 0x239   : > { %v587_v0 = vmul.f32 %v926_v10, %v584_v12 }
 0x23b   : > { %v595_v21 = vmul.f32 %v593_v6, %v587_v0 }
 0x23c   : > { %v573_v14 = vpop.permute.xlu0 %572 }
 0x23d   : > { %v575_v15 = vmul.f32 %v573_v14, %v567_v11 }
 0x23f   : > { %v601_v17 = vpop.permute.xlu1 %600  ;;  %v576_v18 = vadd.f32 %v575_v15, %v556_v16 }
 0x240   : > { %v604_v19 = vsel %vm603_vm14, %v601_v17, 0.0 }
 0x241   : > { %v596_v23 = vadd.f32 %v595_v21, %v576_v18  ;;  %v612_v24 = vmul.f32 %v610_v20, %v604_v19 }
 0x243   : > { %v613_v29 = vadd.f32 %v612_v24, %v596_v23 }
 0x244   : > { %v618_v25 = vpop.permute.xlu0 %617 }
 0x245   : > { %v621_v26 = vsel %vm620_vm15, %v618_v25, 0.0 }
 0x246   : > { %v624_v27 = vmul.f32 %v927_v22, %v621_v26 }
 0x247   : > { %v630_v28 = vpop.permute.xlu1 %629 }
 0x248   : > { %v632_v30 = vmul.f32 %v630_v28, %v624_v27 }
 0x24a   : > { %v633_v31 = vadd.f32 %v632_v30, %v613_v29 }
 0x24c   : > { %634 = vst [vmem:[#allocation2] sm:$0xff] %v633_v31 }
 0x24d PF: > { %v636_v33 = vld [vmem:[%s1278_s2] sm:$0xff]  ;;  %vm638_vm0 = vcmask 64512   ;;  %v637_v34 = vld [vmem:[%s1278_s2 + $0x8] sm:$0xff]  ;;  %s787_s21 = sshll.u32 %s1032_s18, 3  ;;  %s684_s29 = sshll.u32 %s1166_s10, 4  ;;  %s685_s29 = int_to_ptr.vmem [resolvable:$true] %s684_s29 }
 0x24e   : > { %s683_s26 = scalar_lea.hbm %s1280_s4, %s787_s21  ;;  %s671_s5 = scalar_lea.sflag [#allocation5], %s217_s8 }
 0x24f   : > { %s686_s30 = sshll.u32 %s683_s26, 4  ;;  %s978_s11 = scalar_lea.hbm %s1280_s4, 32  ;;  %s687_s30 = int_to_ptr.hbm [resolvable:$true] %s686_s30 }
 0x250   : > { %s972_s6 = sshra.s32 %s687_s30, 4  ;;  %s973_s6 = int_to_ptr.hbm [resolvable:$true] %s972_s6 }
 0x251   : > { %s974_s7 = scalar_lea.hbm %s973_s6, 16  ;;  %p979_p6 = scmp.lt.s32.totalorder %s973_s6, %s1280_s4 }
 0x252   : > { %p975_p2 = scmp.ne.s32.totalorder %s973_s6, %s974_s7  ;;  %p980_p7 = scmp.lt.s32.totalorder %s978_s11, %s974_s7 }
 0x253   : > { %v635_v32 = vld [vmem:[#allocation2] sm:$0xff] }
 0x254   : > { %660 = vmatpush.msra.mxu0 %v635_v32  ;;  %790 = vmatpush.msra.mxu1 %v635_v32  ;;  %p976_p3 = pnand %p975_p2, %p1145_p4  ;;  %p981_p9 = por %p980_p7, %p979_p6 }
 0x255   : > { %784 = vmatmul.msk.f32.vlgmr.msra.gmra.mxu0 %vm638_vm0, %v636_v33  ;;  %785 = vmatmul.msk.f32.vlgmr.msra.gmra.mxu1 %vm638_vm0, %v637_v34 }
 0x256   : > { %p977_p5 = pneg %p976_p3 }
 0x258   : > { %p982_p10 = pnand %p981_p9, %p977_p5 }
 0x2d2   : > { %v662_v35 = vpop.f32.mrf.mxu0  ;;  %v665_v36 = vpop.f32.mrf.mxu1 }
 0x2d3   : > { %668 = vst [vmem:[%s1166_s10] sm:$0xff] %v662_v35 }
 0x2d4   : > { %669 = vst [vmem:[%s1166_s10 + $0x8] sm:$0xff] %v665_v36 }
 0x2d5   : > { %985 = shalt.err (!%p982_p10)
}
 0x2d6   : > { %s1077_s8 = smov 128   ;;  %s1078_s10 = smov 256  }
 0x2d7   : > { %s1079_s14 = smov 8  }
 0x2d8   : > { %795 = dma.vmem_to_hbm [thread:$0]  (%p1145_p4), %s685_s29, 256, %s687_s30, %s671_s5, %s1077_s8, %s1078_s10, %s1079_s14  }
 0x2d9 PF: > { %p807_p11 = scmp.ge.s32.totalorder %s1040_s20, 2  ;;  %s701_s21 = sand.u32 1, %s1020_s15  }
 0x2da   : > { %s702_s22 = scalar_lea.sflag [#allocation5], %s701_s21 }
 0x2db   : > { %p802_p12 = pnand %p807_p11, %p1152_p8 }
 0x2dd   : > { %p803_p13 = pneg %p802_p12 }
 0x2df   : > { %1015 = dma.done.wait (%p803_p13), %s702_s22, 256  }
 0x2e0   : > { %1017 = vsyncadd (%p803_p13), %s702_s22, 4294967040  ;;  %s18_s20 = sadd.s32 1, %s1040_s20   ;;  %s1283_s15 = smov %s1024_s16 }
 0x2e1   : > { %p15_p0 = scmp.ge.s32.totalorder %s18_s20, 4   ;;  %s1284_s16 = smov %s1028_s17 }
 0x2e2   : > { %s1285_s17 = smov %s1158_s28  ;;  %s1286_s18 = smov %s1036_s19 }
 0x2e3   : > { %s1287_s19 = smov %s1289_s23  ;;  %17 = sbr.rel (!%p15_p0) target bundleno = 5 (0x5), region = 84 }
 0x2e8   :  { %708 = vsyncpa [#allocation4], 1 }
 0x2e9   :  { %710 = vsyncpa [#allocation4 + $0x1], 1 }
 0x2ea   :  { %711 = vsyncpa [#allocation5], 1 }
 0x2eb   :  { %713 = vsyncpa [#allocation5 + $0x1], 1 }

</bundles_post_ra>
